<compile_context>
chip_gen: v5e
topology: v5e:2x2
jax: 0.10.0
libtpu: 0.0.40
codegen_flags: <defaults>
</compile_context>

<pallas_src>
import jax
import jax.numpy as jnp
from jax.experimental import pallas as pl
from jax.experimental.pallas import tpu as pltpu

BN_EPS = 1e-5


def _residual_kernel(x_ref, w_ref, gamma_ref, beta_ref, out_ref):
    # x: (B, I), w: (I, O), gamma/beta: (1, O), out: (B, O + I)
    B = x_ref.shape[0]

    x = x_ref[...]                      # native dtype -> MXU fast path
    w = w_ref[...]

    # Linear (no bias: exactly cancelled by the BN batch-mean subtraction).
    h = jnp.dot(x, w, preferred_element_type=jnp.float32)   # (B, O) f32

    # BatchNorm1d, training mode, subtract-mean (numerically safe) statistics.
    inv_b = jnp.float32(1.0 / B)
    mean = jnp.sum(h, axis=0, keepdims=True) * inv_b
    centered = h - mean
    var = jnp.sum(centered * centered, axis=0, keepdims=True) * inv_b

    # Single fused scale/shift + ReLU pass over the (B, O) tile.
    scale = gamma_ref[...].astype(jnp.float32) * jax.lax.rsqrt(var + BN_EPS)
    shift = beta_ref[...].astype(jnp.float32)
    y = jnp.maximum(centered * scale + shift, 0.0)

    # Fused concat built in-register -> ONE lane-dense store of the full row.
    out_ref[...] = jnp.concatenate(
        [y.astype(out_ref.dtype), x.astype(out_ref.dtype)], axis=-1)


def residual_forward(x, w, b, gamma, beta):
    """Pallas implementation of Residual.forward (training-mode BatchNorm1d).

    x:     (B, I)  float32 / bfloat16
    w:     (I, O)  PyTorch Linear weight, pre-transposed
    b:     (O,)    accepted for parity; exactly cancelled by BN -> unused
    gamma: (O,)    BatchNorm1d weight
    beta:  (O,)    BatchNorm1d bias
    returns (B, O + I) == concat([relu(bn(x @ w + b)), x], axis=1)
    """
    del b  # cancelled by BatchNorm's batch-mean subtraction (training mode)
    B, I = x.shape
    O = w.shape[1]

    gamma2 = gamma.reshape(1, O)
    beta2 = beta.reshape(1, O)

    # Batch statistics need the whole batch: ungridded call, full arrays
    # resident in VMEM (CTGAN-scale shapes fit comfortably; on v7x re-check
    # against the 64 MiB budget and tile over O if needed).
    def vmem_spec():
        return pl.BlockSpec(memory_space=pltpu.MemorySpace.VMEM)

    cost = pl.CostEstimate(
        flops=2 * B * I * O + 8 * B * O,
        transcendentals=O,  # rsqrt per feature
        bytes_accessed=4 * (B * I + I * O + 2 * O + B * (O + I)),
    )

    return pl.pallas_call(
        _residual_kernel,
        out_shape=jax.ShapeDtypeStruct((B, O + I), x.dtype),
        in_specs=[vmem_spec(), vmem_spec(), vmem_spec(), vmem_spec()],
        out_specs=vmem_spec(),
        cost_estimate=cost,
    )(x, w, gamma2, beta2)


if __name__ == "__main__":
    key = jax.random.PRNGKey(0)
    k_x, k_w, k_b, k_g, k_beta = jax.random.split(key, 5)

    # Small CTGAN-like shapes; O + I = 128 keeps the fused output row
    # lane-aligned so the single store is unmasked and lane-dense.
    B, I, O = 8, 64, 64

    x = jax.random.normal(k_x, (B, I), dtype=jnp.float32)

    # Deterministic param init (mimics nn.Linear's uniform(-1/sqrt(I), 1/sqrt(I))).
    bound = 1.0 / (I ** 0.5)
    w = jax.random.uniform(k_w, (I, O), minval=-bound, maxval=bound, dtype=jnp.float32)
    b = jax.random.uniform(k_b, (O,), minval=-bound, maxval=bound, dtype=jnp.float32)
    # BatchNorm1d default init is gamma=1, beta=0; perturb deterministically.
    gamma = jnp.ones((O,), dtype=jnp.float32) + 0.01 * jax.random.normal(k_g, (O,), dtype=jnp.float32)
    beta = 0.01 * jax.random.normal(k_beta, (O,), dtype=jnp.float32)

    y = residual_forward(x, w, b, gamma, beta)
    jax.block_until_ready(y)

    assert y.shape == (B, O + I), y.shape

    # Pure-JAX reference (bias included -- it cancels under training-mode BN).
    h_ref = x @ w + b
    mean = h_ref.mean(axis=0, keepdims=True)
    var = ((h_ref - mean) ** 2).mean(axis=0, keepdims=True)  # biased, matches torch
    out_ref = jnp.maximum((h_ref - mean) / jnp.sqrt(var + BN_EPS) * gamma + beta, 0.0)
    y_ref = jnp.concatenate([out_ref, x], axis=1)
    assert jnp.allclose(y, y_ref, atol=1e-4, rtol=1e-4), float(jnp.abs(y - y_ref).max())

    print("KERNEL_OK")
</pallas_src>

<mosaic_0001>
module attributes {stable_mosaic.version = 11 : i64} {
  func.func @_residual_kernel(%arg0: memref<8x64xf32, #tpu.memory_space<vmem>>, %arg1: memref<64x64xf32, #tpu.memory_space<vmem>>, %arg2: memref<1x64xf32, #tpu.memory_space<vmem>>, %arg3: memref<1x64xf32, #tpu.memory_space<vmem>>, %arg4: memref<8x128xf32, #tpu.memory_space<vmem>>) attributes {dimension_semantics = [], scalar_prefetch = 0 : i64, scratch_operands = 0 : i64, tpu.core_type = #tpu.core_type<tc>} {
    %c0 = arith.constant 0 : index
    %c0_0 = arith.constant 0 : index
    %0 = vector.load %arg0[%c0, %c0_0] : memref<8x64xf32, #tpu.memory_space<vmem>>, vector<8x64xf32>
    %c0_1 = arith.constant 0 : index
    %c0_2 = arith.constant 0 : index
    %1 = vector.load %arg1[%c0_1, %c0_2] : memref<64x64xf32, #tpu.memory_space<vmem>>, vector<64x64xf32>
    %cst = arith.constant dense<0.000000e+00> : vector<8x64xf32>
    %2 = tpu.matmul %0, %1, %cst {dimension_numbers = #tpu.dot_dimension_numbers<[1], [0], [0], [1], [0, 0, 1, 1], [], []>} : vector<8x64xf32>, vector<64x64xf32>, vector<8x64xf32> -> vector<8x64xf32>
    %cst_3 = arith.constant dense<0.000000e+00> : vector<64xf32>
    %3 = vector.multi_reduction <add>, %2, %cst_3 [0] : vector<8x64xf32> to vector<64xf32>
    %4 = vector.shape_cast %3 : vector<64xf32> to vector<1x64xf32>
    %cst_4 = arith.constant 1.250000e-01 : f32
    %5 = vector.broadcast %cst_4 : f32 to vector<1x64xf32>
    %6 = arith.mulf %4, %5 : vector<1x64xf32>
    %7 = vector.broadcast %6 : vector<1x64xf32> to vector<8x64xf32>
    %8 = arith.subf %2, %7 : vector<8x64xf32>
    %9 = arith.mulf %8, %8 : vector<8x64xf32>
    %cst_5 = arith.constant dense<0.000000e+00> : vector<64xf32>
    %10 = vector.multi_reduction <add>, %9, %cst_5 [0] : vector<8x64xf32> to vector<64xf32>
    %11 = vector.shape_cast %10 : vector<64xf32> to vector<1x64xf32>
    %cst_6 = arith.constant 1.250000e-01 : f32
    %12 = vector.broadcast %cst_6 : f32 to vector<1x64xf32>
    %13 = arith.mulf %11, %12 : vector<1x64xf32>
    %c0_7 = arith.constant 0 : index
    %c0_8 = arith.constant 0 : index
    %14 = vector.load %arg2[%c0_7, %c0_8] : memref<1x64xf32, #tpu.memory_space<vmem>>, vector<1x64xf32>
    %cst_9 = arith.constant 9.99999974E-6 : f32
    %15 = vector.broadcast %cst_9 : f32 to vector<1x64xf32>
    %16 = arith.addf %13, %15 : vector<1x64xf32>
    %17 = math.rsqrt %16 : vector<1x64xf32>
    %18 = arith.mulf %14, %17 : vector<1x64xf32>
    %c0_10 = arith.constant 0 : index
    %c0_11 = arith.constant 0 : index
    %19 = vector.load %arg3[%c0_10, %c0_11] : memref<1x64xf32, #tpu.memory_space<vmem>>, vector<1x64xf32>
    %20 = vector.broadcast %18 : vector<1x64xf32> to vector<8x64xf32>
    %21 = arith.mulf %8, %20 : vector<8x64xf32>
    %22 = vector.broadcast %19 : vector<1x64xf32> to vector<8x64xf32>
    %23 = arith.addf %21, %22 : vector<8x64xf32>
    %cst_12 = arith.constant 0.000000e+00 : f32
    %24 = vector.broadcast %cst_12 : f32 to vector<8x64xf32>
    %25 = arith.maximumf %23, %24 : vector<8x64xf32>
    %26 = tpu.concatenate %25, %0 in 1 : vector<8x64xf32>, vector<8x64xf32> -> vector<8x128xf32>
    %c0_13 = arith.constant 0 : index
    %c0_14 = arith.constant 0 : index
    %27 = vector.load %arg4[%c0_13, %c0_14] : memref<8x128xf32, #tpu.memory_space<vmem>>, vector<8x128xf32>
    tpu.vector_store %arg4[%c0_13, %c0_14], %26 {strides = array<i32>} : memref<8x128xf32, #tpu.memory_space<vmem>>, vector<8x128xf32>,
    return
  }
}

</mosaic_0001>

<bundles_post_ra>
// kernel: tpu_custom_call.1
= control target key start
LH: loop header
LB: loop body
LE: loop exit
PB: predicated region body
PF: predicated region fallthrough
CT: control target
= control target key end

     0   :  { %9 = vsyncpa [#allocation3], 0  ;;  %s283_s0 = inlined_call_operand.hbm [shape: f32[8,64], index: 0, kind: input, shape index: {}]   ;;  %s284_s1 = inlined_call_operand.hbm [shape: f32[64,64], index: 1, kind: input, shape index: {}]   ;;  %s285_s2 = inlined_call_operand.vmem [shape: f32[1,64], index: 2, kind: input, shape index: {}]   ;;  %s286_s3 = inlined_call_operand.vmem [shape: f32[1,64], index: 3, kind: input, shape index: {}]   ;;  %s287_s4 = inlined_call_operand.hbm [shape: f32[8,128], index: 4, kind: output, shape index: {}]  }
   0x1   :  { %10 = vsyncpa [#allocation6], 0 }
   0x2   :  { %11 = vsyncpa [#allocation4], 0  ;;  %s17_s17 = sshll.u32 %s283_s0, 4  ;;  %s233_s18 = smov [#allocation2]   ;;  %s18_s17 = int_to_ptr.hbm [resolvable:$true] %s17_s17 }
   0x3   :  { %s19_s19 = sshll.u32 %s233_s18, 4  ;;  %s27_s22 = sshll.u32 %s284_s1, 4  ;;  %s20_s19 = int_to_ptr.vmem [resolvable:$true] %s19_s19  ;;  %s28_s22 = int_to_ptr.hbm [resolvable:$true] %s27_s22 }
   0x4   :  { %22 = dma.hbm_to_vmem [thread:$0]  %s18_s17, 128, %s20_s19, [#allocation3]  }
   0x5   :  { %s234_s23 = smov [#allocation5]   ;;  %s235_s25 = smov 128  }
   0x6   :  { %s29_s24 = sshll.u32 %s234_s23, 4  ;;  %s236_s26 = smov 8   ;;  %s30_s24 = int_to_ptr.vmem [resolvable:$true] %s29_s24 }
   0x7   :  { %35 = dma.hbm_to_vmem [thread:$0]  %s28_s22, 1024, %s30_s24, [#allocation6], %s235_s25, %s235_s25, %s236_s26  }
   0x8   :  { %227 = dma.done.wait [#allocation3], 128  }
   0x9   :  { %228 = vsyncadd [#allocation3], 4294967168 }
   0xa   :  { %229 = dma.done.wait [#allocation6], 1024  }
   0xb   :  { %230 = vsyncadd [#allocation6], 4294966272  ;;  %v56_v0 = vld [vmem:[#allocation5 + $0x38] sm:$0xff]  ;;  %v55_v1 = vld [vmem:[#allocation5 + $0x30] sm:$0xff]  ;;  %s237_s0 = smov 64   ;;  %vm57_vm0 = vcmask 523264  }
   0xc   :  { %69 = vmatpush.msra.mxu0 %v56_v0  ;;  %v54_v2 = vld [vmem:[#allocation5 + $0x28] sm:$0xff]  ;;  %v48_v3 = vld [vmem:[#allocation2] sm:$0xff]  ;;  %v53_v4 = vld [vmem:[#allocation5 + $0x20] sm:$0xff]  ;;  %s238_s30 = smov [#allocation7]   ;;  %s134_s8 = sshll.u32 %s287_s4, 4  ;;  %s135_s8 = int_to_ptr.hbm [resolvable:$true] %s134_s8 }
   0xd   :  { %122 = vrot.lane.b32.xlu0 %v48_v3, %s237_s0  ;;  %v52_v5 = vld [vmem:[#allocation5 + $0x18] sm:$0xff]  ;;  %v51_v6 = vld [vmem:[#allocation5 + $0x10] sm:$0xff]  ;;  %v50_v7 = vld [vmem:[#allocation5 + $0x8] sm:$0xff]  ;;  %s132_s5 = sshll.u32 %s238_s30, 4  ;;  %s133_s5 = int_to_ptr.vmem [resolvable:$true] %s132_s5 }
   0xe   :  { %70 = vmatpush.msra.mxu0 %v55_v1  ;;  %v49_v8 = vld [vmem:[#allocation5] sm:$0xff]  ;;  %v99_v34 = vld [vmem:[%s285_s2] sm:$0x1] }
   0xf   :  { %v152_v39 = vld [vmem:[%s286_s3] ss:$0 sm:$0xff] }
  0x10   :  { %71 = vmatpush.msra.mxu0 %v54_v2 }
  0x12   :  { %72 = vmatpush.msra.mxu0 %v53_v4 }
  0x14   :  { %73 = vmatpush.msra.mxu0 %v52_v5 }
  0x16   :  { %74 = vmatpush.msra.mxu0 %v51_v6 }
  0x18   :  { %75 = vmatpush.msra.mxu0 %v50_v7 }
  0x1a   :  { %76 = vmatpush.msra.mxu0 %v49_v8 }
  0x1b   :  { %145 = vmatmul.msk.f32.vlgmr.msra.gmra.mxu0 %vm57_vm0, %v48_v3 }
  0x7f   :  { %v123_v42 = vpop.permute.xlu0 %122 }
  0x98   :  { %v78_v9 = vpop.f32.mrf.mxu0 }
  0x99   :  { %v81_v10 = vsel %vm57_vm0, %v78_v9, 0.0 }
  0x9a   :  { %v82_v11 = vrot.slane %v81_v10, 4 }
  0x9c   :  { %v83_v12 = vadd.f32 %v82_v11, %v81_v10 }
  0x9e   :  { %v84_v13 = vrot.slane %v83_v12, 2 }
  0xa0   :  { %v85_v14 = vadd.f32 %v84_v13, %v83_v12 }
  0xa2   :  { %v86_v15 = vrot.slane %v85_v14, 1 }
  0xa4   :  { %v87_v16 = vadd.f32 %v86_v15, %v85_v14 }
  0xa6   :  { %v88_v17 = vmul.f32 0.125, %v87_v16 }
  0xa8   :  { %v89_v18 = vsub.f32 %v78_v9, %v88_v17 }
  0xaa   :  { %v90_v19 = vmul.f32 %v89_v18, %v89_v18 }
  0xac   :  { %v91_v20 = vsel %vm57_vm0, %v90_v19, 0.0 }
  0xad   :  { %v92_v21 = vrot.slane %v91_v20, 4 }
  0xaf   :  { %v93_v22 = vadd.f32 %v92_v21, %v91_v20 }
  0xb1   :  { %v94_v23 = vrot.slane %v93_v22, 2 }
  0xb3   :  { %v95_v24 = vadd.f32 %v94_v23, %v93_v22 }
  0xb5   :  { %v96_v25 = vrot.slane %v95_v24, 1 }
  0xb7   :  { %v97_v26 = vadd.f32 %v96_v25, %v95_v24 }
  0xb9   :  { %v98_v27 = vmul.f32 0.125, %v97_v26 }
  0xbb   :  { %v100_v28 = vadd.f32 1e-05, %v98_v27 }
  0xbd   :  { %153 = vrsqrt.f32 %v100_v28  ;;  %vm107_vm2 = vweird.f32 %v100_v28 }
  0xc3   :  { %v154_v29 = vpop.eup %153 }
  0xc4   :  { %v102_v30 = vmul.f32 %v154_v29, %v100_v28  ;;  %vm108_vm1 = vweird.f32 %v154_v29 }
  0xc5   :  { %vm109_vm3 = vmor %vm107_vm2, %vm108_vm1 }
  0xc6   :  { %v103_v31 = vmul.f32 %v154_v29, %v102_v30 }
  0xc8   :  { %v104_v32 = vmul.f32 0.5, %v103_v31 }
  0xca   :  { %v105_v33 = vsub.f32 1.5, %v104_v32 }
  0xcc   :  { %v106_v35 = vmul.f32 %v154_v29, %v105_v33 }
  0xce   :  { %v110_v36 = vsel %vm109_vm3, %v154_v29, %v106_v35 }
  0xcf   :  { %v111_v37 = vmul.f32 %v110_v36, %v99_v34 }
  0xd1   :  { %v114_v38 = vperm.slane %v111_v37, 0 }
  0xd3   :  { %v116_v40 = vmul.f32 %v114_v38, %v89_v18 }
  0xd5   :  { %v120_v41 = vadd.f32 %v152_v39, %v116_v40 }
  0xd7   :  { %v121_v43 = vmax.f32 %v120_v41, 0.0 }
  0xd9   :  { %v125_v44 = vsel %vm57_vm0, %v121_v43, %v123_v42 }
  0xda   :  { %126 = vst [vmem:[#allocation7] sm:$0xff] %v125_v44 }
  0xdb   :  { %137 = dma.vmem_to_hbm [thread:$0]  %s133_s5, 128, %s135_s8, [#allocation4]  }
  0xdc   :  { %231 = dma.done.wait [#allocation4], 128  }
  0xdd   :  { %232 = vsyncadd [#allocation4], 4294967168 }
  0xde   :  { %142 = vsyncpa [#allocation3], 1 }
  0xdf   :  { %143 = vsyncpa [#allocation6], 1 }
  0xe0   :  { %144 = vsyncpa [#allocation4], 1 }

</bundles_post_ra>
